<compile_context>
chip_gen: v7x
topology: tpu7x:2x2x1
jax: 0.10.0
libtpu: 0.0.40
codegen_flags: <defaults>
</compile_context>

<pallas_src>
import functools

import jax
import jax.numpy as jnp
import numpy as np
from jax import lax
from jax.experimental import pallas as pl
from jax.experimental.pallas import tpu as pltpu

EPS = 1e-5          # nn.GroupNorm default eps
NEG_SLOPE = 0.2     # LeakyReLU(0.2)
NUM_GROUPS = 8      # nn.GroupNorm(8, mip)


def _arpg_kernel(x_ref, p_ref, w1_ref, b1_ref, g_ref, beta_ref, gmat_ref,
                 wh_ref, bh_ref, ww_ref, bw_ref, rh_ref, rw_ref, o_ref,
                 *, mm_dtype):
    """One grid step: a batch block folded into the sublane (M) dimension.

    Shapes inside the kernel (B = batch elements per grid step):
      x    : (B*c,   hw)      lane-dense input block
      P    : (hw,    L)       combined avg-pool matrix (L = h + w)
      W1bd : (B*mip, B*c)     block-diagonal conv1 weight
      gmat : (B*mip, B*mip)   group-averaging matrix (1/(gs*L) per member)
      Wh/Ww: (B*oup, B*mip)   block-diagonal conv_h / conv_w weights
      Rh/Rw: (L,     hw)      one-hot expansion matrices
      out  : (B*oup, hw)
    """
    f32 = jnp.float32

    def mm(a, b):
        return jnp.dot(a.astype(mm_dtype), b.astype(mm_dtype),
                       preferred_element_type=f32)

    x = x_ref[...]                                           # (B*c, hw)

    # --- adaptive avg pools (h then w) as one MXU matmul ---------------------
    y = mm(x, p_ref[...])                                    # (B*c, L)

    # --- conv1 (1x1) == block-diagonal channel matmul over the folded batch --
    y1 = mm(w1_ref[...], y) + b1_ref[...]                    # (B*mip, L)

    # --- GroupNorm(num_groups, mip), two-pass centered variance --------------
    # gmat averages row statistics over each (batch, group); stats stay f32.
    gmat = gmat_ref[...]
    row_sum = jnp.sum(y1, axis=1, keepdims=True)                   # (B*mip, 1)
    mean = jnp.dot(gmat, row_sum, preferred_element_type=f32)      # group mean
    yc = y1 - mean
    row_sq = jnp.sum(yc * yc, axis=1, keepdims=True)
    var = jnp.dot(gmat, row_sq, preferred_element_type=f32)        # group var
    y1 = yc * lax.rsqrt(var + EPS) * g_ref[...] + beta_ref[...]

    # --- LeakyReLU(0.2) -------------------------------------------------------
    y1 = jnp.where(y1 > 0, y1, NEG_SLOPE * y1)

    # --- conv_h / conv_w (1x1) + sigmoid over the full (B*mip, L) RHS ---------
    # (no lane slicing; "wrong pool" columns are discarded by Rh/Rw below)
    a_h = jax.nn.sigmoid(mm(wh_ref[...], y1) + bh_ref[...])   # (B*oup, L)
    a_w = jax.nn.sigmoid(mm(ww_ref[...], y1) + bw_ref[...])   # (B*oup, L)

    # --- out[o, i*w + j] = a_h[o, i] * a_w[o, h + j], lane-dense --------------
    out_h = mm(a_h, rh_ref[...])                               # (B*oup, hw)
    out_w = mm(a_w, rw_ref[...])
    o_ref[...] = (out_h * out_w).astype(o_ref.dtype)


def _pick_batch_block(n, c, oup, mip, hw, L):
    """VMEM-budget-driven batch block; prefers >=2 grid steps (v7x: 2 TCs)."""
    budget = 24 * 1024 * 1024   # conservative: headroom under v7x's 64 MiB VMEM

    def pad_bytes(r, l):        # f32, padded to (8, 128) tiles
        return 4 * (-(-r // 8) * 8) * (-(-l // 128) * 128)

    def footprint(b):
        io = 2 * (pad_bytes(b * c, hw) + pad_bytes(b * oup, hw))   # dbl-buffered
        consts = (pad_bytes(hw, L) + 2 * pad_bytes(L, hw)          # P, Rh, Rw
                  + pad_bytes(b * mip, b * c)                      # W1 block-diag
                  + 2 * pad_bytes(b * oup, b * mip)                # Wh, Ww
                  + pad_bytes(b * mip, b * mip)                    # gmat
                  + 3 * pad_bytes(b * mip, 1) + 2 * pad_bytes(b * oup, 1))
        return io + 2 * consts

    def valid(b):
        if n % b:
            return False
        if b != n and ((b * c) % 8 or (b * oup) % 8):
            return False        # keep full-(8,128) sublane tiles on x / out
        return footprint(b) <= budget

    cands = [b for b in range(1, n + 1) if valid(b)] or [n]
    multi = [b for b in cands if n // b >= 2]    # >=2 steps -> both v7x cores
    b_blk = max(multi) if multi else max(cands)
    vmem_limit = int(min(48 * 2**20, max(16 * 2**20, 2 * footprint(b_blk))))
    return b_blk, vmem_limit


def arpg_forward(x, params, num_groups=NUM_GROUPS, use_bf16_matmul=False):
    """x: (n, c, h, w) float32.  Returns (n, oup, h, w) float32."""
    n, c, h, w = x.shape
    w1, b1, gamma, beta, wh, bh, ww, bw = params
    mip = w1.shape[0]
    oup = wh.shape[0]
    hw = h * w
    L = h + w
    assert mip % num_groups == 0, "mip must be divisible by num_groups"

    b_blk, vmem_limit = _pick_batch_block(n, c, oup, mip, hw, L)
    grid = (n // b_blk,)

    # --- host-side constant matrices (static shapes only) --------------------
    k = np.arange(hw)
    row = k // w
    col = k % w
    P = np.zeros((hw, L), np.float32)
    P[k, row] = 1.0 / w                 # pool over width  -> columns [0, h)
    P[k, h + col] = 1.0 / h             # pool over height -> columns [h, h+w)
    Rh = np.zeros((L, hw), np.float32)
    Rh[row, k] = 1.0                    # expand a_h[:, i]   to positions i*w + j
    Rw = np.zeros((L, hw), np.float32)
    Rw[h + col, k] = 1.0                # expand a_w[:, h+j] to positions i*w + j
    gs = mip // num_groups
    gid = np.arange(b_blk * mip) // gs  # (batch, group) id of each folded row
    gmat = (gid[:, None] == gid[None, :]).astype(np.float32) / float(gs * L)
    P, Rh, Rw, gmat = map(jnp.asarray, (P, Rh, Rw, gmat))

    # --- fold the batch block into the matmul M (sublane) dimension ----------
    eyeB = jnp.eye(b_blk, dtype=jnp.float32)
    W1bd = jnp.kron(eyeB, w1)           # (B*mip, B*c)
    Whbd = jnp.kron(eyeB, wh)           # (B*oup, B*mip)
    Wwbd = jnp.kron(eyeB, ww)           # (B*oup, B*mip)
    tile = lambda v: jnp.tile(v, (b_blk, 1))
    b1t, gammat, betat = tile(b1), tile(gamma), tile(beta)
    bht, bwt = tile(bh), tile(bw)

    x_flat = x.reshape(n * c, hw)       # lane-dense, sublane = batch*channel

    kernel = functools.partial(
        _arpg_kernel,
        mm_dtype=jnp.bfloat16 if use_bf16_matmul else jnp.float32)

    const = lambda a: pl.BlockSpec(a.shape, lambda i: (0, 0))

    steps = n // b_blk
    flops = steps * int(
        2 * (b_blk * c) * hw * L                  # pooling matmul
        + 2 * (b_blk * mip) * (b_blk * c) * L     # conv1 (block-diagonal)
        + 4 * (b_blk * mip) ** 2                  # group mean / var matmuls
        + 4 * (b_blk * oup) * (b_blk * mip) * L   # conv_h + conv_w
        + 4 * (b_blk * oup) * L * hw)             # expansion matmuls
    transcendentals = int(n * (2 * oup * L + mip))
    const_bytes = 4 * int(sum(int(a.size) for a in
                              (P, Rh, Rw, gmat, W1bd, Whbd, Wwbd,
                               b1t, gammat, betat, bht, bwt)))
    bytes_accessed = int(4 * n * (c + oup) * hw + const_bytes)
    cost = pl.CostEstimate(flops=flops, transcendentals=transcendentals,
                           bytes_accessed=bytes_accessed)

    out_flat = pl.pallas_call(
        kernel,
        out_shape=jax.ShapeDtypeStruct((n * oup, hw), jnp.float32),
        grid=grid,
        in_specs=[
            pl.BlockSpec((b_blk * c, hw), lambda i: (i, 0)),
            const(P), const(W1bd), const(b1t), const(gammat), const(betat),
            const(gmat), const(Whbd), const(bht), const(Wwbd), const(bwt),
            const(Rh), const(Rw),
        ],
        out_specs=pl.BlockSpec((b_blk * oup, hw), lambda i: (i, 0)),
        compiler_params=pltpu.CompilerParams(
            dimension_semantics=("parallel",),
            vmem_limit_bytes=vmem_limit),
        cost_estimate=cost,
    )(x_flat, P, W1bd, b1t, gammat, betat, gmat, Whbd, bht, Wwbd, bwt, Rh, Rw)

    return out_flat.reshape(n, oup, h, w)


# ---------------- pure-JAX reference (mirrors the PyTorch forward) -----------
def arpg_ref(x, params):
    w1, b1, gamma, beta, wh, bh, ww, bw = params
    n, c, h, w = x.shape
    mip = w1.shape[0]
    L = h + w
    hi = lax.Precision.HIGHEST
    ph = jnp.mean(x, axis=3)                                  # (n, c, h)
    pw = jnp.mean(x, axis=2)                                  # (n, c, w)
    y = jnp.concatenate([ph, pw], axis=2)                     # (n, c, h+w)
    y = jnp.einsum('oc,ncl->nol', w1, y, precision=hi) + b1[None]
    G = NUM_GROUPS
    gs = mip // G
    yg = y.reshape(n, G, gs, L)
    mean = yg.mean(axis=(2, 3), keepdims=True)
    var = yg.var(axis=(2, 3), keepdims=True)
    yg = (yg - mean) / jnp.sqrt(var + EPS)
    y = yg.reshape(n, mip, L) * gamma[None] + beta[None]
    y = jnp.where(y > 0, y, NEG_SLOPE * y)
    yh, yw = y[:, :, :h], y[:, :, h:]
    ah = jax.nn.sigmoid(jnp.einsum('om,nml->nol', wh, yh, precision=hi) + bh[None])
    aw = jax.nn.sigmoid(jnp.einsum('om,nml->nol', ww, yw, precision=hi) + bw[None])
    return ah[:, :, :, None] * aw[:, :, None, :]


def init_params(key, inp, oup, reduction=32):
    mip = max(8, inp // reduction)
    ks = jax.random.split(key, 8)
    w1 = (jax.random.normal(ks[0], (mip, inp)) * 0.3).astype(jnp.float32)
    b1 = (jax.random.normal(ks[1], (mip, 1)) * 0.1).astype(jnp.float32)
    gamma = (1.0 + 0.1 * jax.random.normal(ks[2], (mip, 1))).astype(jnp.float32)
    beta = (0.1 * jax.random.normal(ks[3], (mip, 1))).astype(jnp.float32)
    wh = (jax.random.normal(ks[4], (oup, mip)) * 0.3).astype(jnp.float32)
    bh = (jax.random.normal(ks[5], (oup, 1)) * 0.1).astype(jnp.float32)
    ww = (jax.random.normal(ks[6], (oup, mip)) * 0.3).astype(jnp.float32)
    bw = (jax.random.normal(ks[7], (oup, 1)) * 0.1).astype(jnp.float32)
    return (w1, b1, gamma, beta, wh, bh, ww, bw)


if __name__ == "__main__":
    key = jax.random.PRNGKey(0)
    k_x, k_p = jax.random.split(key)

    n, inp, oup, h, w = 2, 4, 4, 16, 16
    x = jax.random.normal(k_x, (n, inp, h, w), dtype=jnp.float32)
    params = init_params(k_p, inp, oup, reduction=32)

    fwd = jax.jit(arpg_forward)
    out = jax.block_until_ready(fwd(x, params))

    ref = jax.block_until_ready(arpg_ref(x, params))
    assert out.shape == (n, oup, h, w)
    np.testing.assert_allclose(np.asarray(out), np.asarray(ref),
                               rtol=1e-4, atol=1e-4)
    print("KERNEL_OK")
</pallas_src>

<mosaic_0001>
module attributes {stable_mosaic.version = 11 : i64} {
  func.func @_arpg_kernel(%arg0: i32, %arg1: memref<8x256xf32, #tpu.memory_space<vmem>>, %arg2: memref<256x32xf32, #tpu.memory_space<vmem>>, %arg3: memref<16x8xf32, #tpu.memory_space<vmem>>, %arg4: memref<16x1xf32, #tpu.memory_space<vmem>>, %arg5: memref<16x1xf32, #tpu.memory_space<vmem>>, %arg6: memref<16x1xf32, #tpu.memory_space<vmem>>, %arg7: memref<16x16xf32, #tpu.memory_space<vmem>>, %arg8: memref<8x16xf32, #tpu.memory_space<vmem>>, %arg9: memref<8x1xf32, #tpu.memory_space<vmem>>, %arg10: memref<8x16xf32, #tpu.memory_space<vmem>>, %arg11: memref<8x1xf32, #tpu.memory_space<vmem>>, %arg12: memref<32x256xf32, #tpu.memory_space<vmem>>, %arg13: memref<32x256xf32, #tpu.memory_space<vmem>>, %arg14: memref<8x256xf32, #tpu.memory_space<vmem>>) attributes {dimension_semantics = [#tpu.dimension_semantics<parallel>], iteration_bounds = array<i64: 1>, scalar_prefetch = 0 : i64, scratch_operands = 0 : i64, tpu.core_type = #tpu.core_type<tc>, window_params = [{transform_indices = @transform_0, window_bounds = array<i64: 8, 256>}, {pipeline_mode = #tpu.pipeline_mode<synchronous>, transform_indices = @transform_1, window_bounds = array<i64: 256, 32>}, {pipeline_mode = #tpu.pipeline_mode<synchronous>, transform_indices = @transform_2, window_bounds = array<i64: 16, 8>}, {pipeline_mode = #tpu.pipeline_mode<synchronous>, transform_indices = @transform_3, window_bounds = array<i64: 16, 1>}, {pipeline_mode = #tpu.pipeline_mode<synchronous>, transform_indices = @transform_4, window_bounds = array<i64: 16, 1>}, {pipeline_mode = #tpu.pipeline_mode<synchronous>, transform_indices = @transform_5, window_bounds = array<i64: 16, 1>}, {pipeline_mode = #tpu.pipeline_mode<synchronous>, transform_indices = @transform_6, window_bounds = array<i64: 16, 16>}, {pipeline_mode = #tpu.pipeline_mode<synchronous>, transform_indices = @transform_7, window_bounds = array<i64: 8, 16>}, {pipeline_mode = #tpu.pipeline_mode<synchronous>, transform_indices = @transform_8, window_bounds = array<i64: 8, 1>}, {pipeline_mode = #tpu.pipeline_mode<synchronous>, transform_indices = @transform_9, window_bounds = array<i64: 8, 16>}, {pipeline_mode = #tpu.pipeline_mode<synchronous>, transform_indices = @transform_10, window_bounds = array<i64: 8, 1>}, {pipeline_mode = #tpu.pipeline_mode<synchronous>, transform_indices = @transform_11, window_bounds = array<i64: 32, 256>}, {pipeline_mode = #tpu.pipeline_mode<synchronous>, transform_indices = @transform_12, window_bounds = array<i64: 32, 256>}, {transform_indices = @transform_13, window_bounds = array<i64: 8, 256>}]} {
    %c0 = arith.constant 0 : index
    %c0_0 = arith.constant 0 : index
    %0 = vector.load %arg1[%c0, %c0_0] : memref<8x256xf32, #tpu.memory_space<vmem>>, vector<8x256xf32>
    %c0_1 = arith.constant 0 : index
    %c0_2 = arith.constant 0 : index
    %1 = vector.load %arg2[%c0_1, %c0_2] : memref<256x32xf32, #tpu.memory_space<vmem>>, vector<256x32xf32>
    %cst = arith.constant dense<0.000000e+00> : vector<8x32xf32>
    %2 = tpu.matmul %0, %1, %cst {dimension_numbers = #tpu.dot_dimension_numbers<[1], [0], [0], [1], [0, 0, 1, 1], [], []>} : vector<8x256xf32>, vector<256x32xf32>, vector<8x32xf32> -> vector<8x32xf32>
    %c0_3 = arith.constant 0 : index
    %c0_4 = arith.constant 0 : index
    %3 = vector.load %arg3[%c0_3, %c0_4] : memref<16x8xf32, #tpu.memory_space<vmem>>, vector<16x8xf32>
    %cst_5 = arith.constant dense<0.000000e+00> : vector<16x32xf32>
    %4 = tpu.matmul %3, %2, %cst_5 {dimension_numbers = #tpu.dot_dimension_numbers<[1], [0], [0], [1], [0, 0, 1, 1], [], []>} : vector<16x8xf32>, vector<8x32xf32>, vector<16x32xf32> -> vector<16x32xf32>
    %c0_6 = arith.constant 0 : index
    %c0_7 = arith.constant 0 : index
    %5 = vector.load %arg4[%c0_6, %c0_7] : memref<16x1xf32, #tpu.memory_space<vmem>>, vector<16x1xf32>
    %6 = vector.broadcast %5 : vector<16x1xf32> to vector<16x32xf32>
    %7 = arith.addf %4, %6 : vector<16x32xf32>
    %c0_8 = arith.constant 0 : index
    %c0_9 = arith.constant 0 : index
    %8 = vector.load %arg7[%c0_8, %c0_9] : memref<16x16xf32, #tpu.memory_space<vmem>>, vector<16x16xf32>
    %cst_10 = arith.constant dense<0.000000e+00> : vector<16xf32>
    %9 = vector.multi_reduction <add>, %7, %cst_10 [1] : vector<16x32xf32> to vector<16xf32>
    %10 = vector.shape_cast %9 : vector<16xf32> to vector<16x1xf32>
    %cst_11 = arith.constant dense<0.000000e+00> : vector<16x1xf32>
    %11 = tpu.matmul %8, %10, %cst_11 {dimension_numbers = #tpu.dot_dimension_numbers<[1], [0], [0], [1], [0, 0, 1, 1], [], []>} : vector<16x16xf32>, vector<16x1xf32>, vector<16x1xf32> -> vector<16x1xf32>
    %12 = vector.broadcast %11 : vector<16x1xf32> to vector<16x32xf32>
    %13 = arith.subf %7, %12 : vector<16x32xf32>
    %14 = arith.mulf %13, %13 : vector<16x32xf32>
    %cst_12 = arith.constant dense<0.000000e+00> : vector<16xf32>
    %15 = vector.multi_reduction <add>, %14, %cst_12 [1] : vector<16x32xf32> to vector<16xf32>
    %16 = vector.shape_cast %15 : vector<16xf32> to vector<16x1xf32>
    %cst_13 = arith.constant dense<0.000000e+00> : vector<16x1xf32>
    %17 = tpu.matmul %8, %16, %cst_13 {dimension_numbers = #tpu.dot_dimension_numbers<[1], [0], [0], [1], [0, 0, 1, 1], [], []>} : vector<16x16xf32>, vector<16x1xf32>, vector<16x1xf32> -> vector<16x1xf32>
    %cst_14 = arith.constant 9.99999974E-6 : f32
    %18 = vector.broadcast %cst_14 : f32 to vector<16x1xf32>
    %19 = arith.addf %17, %18 : vector<16x1xf32>
    %20 = math.rsqrt %19 : vector<16x1xf32>
    %21 = vector.broadcast %20 : vector<16x1xf32> to vector<16x32xf32>
    %22 = arith.mulf %13, %21 : vector<16x32xf32>
    %c0_15 = arith.constant 0 : index
    %c0_16 = arith.constant 0 : index
    %23 = vector.load %arg5[%c0_15, %c0_16] : memref<16x1xf32, #tpu.memory_space<vmem>>, vector<16x1xf32>
    %24 = vector.broadcast %23 : vector<16x1xf32> to vector<16x32xf32>
    %25 = arith.mulf %22, %24 : vector<16x32xf32>
    %c0_17 = arith.constant 0 : index
    %c0_18 = arith.constant 0 : index
    %26 = vector.load %arg6[%c0_17, %c0_18] : memref<16x1xf32, #tpu.memory_space<vmem>>, vector<16x1xf32>
    %27 = vector.broadcast %26 : vector<16x1xf32> to vector<16x32xf32>
    %28 = arith.addf %25, %27 : vector<16x32xf32>
    %cst_19 = arith.constant 0.000000e+00 : f32
    %29 = vector.broadcast %cst_19 : f32 to vector<16x32xf32>
    %30 = arith.cmpf ogt, %28, %29 : vector<16x32xf32>
    %cst_20 = arith.constant 2.000000e-01 : f32
    %31 = vector.broadcast %cst_20 : f32 to vector<16x32xf32>
    %32 = arith.mulf %31, %28 : vector<16x32xf32>
    %33 = arith.select %30, %28, %32 : vector<16x32xi1>, vector<16x32xf32>
    %c0_21 = arith.constant 0 : index
    %c0_22 = arith.constant 0 : index
    %34 = vector.load %arg8[%c0_21, %c0_22] : memref<8x16xf32, #tpu.memory_space<vmem>>, vector<8x16xf32>
    %cst_23 = arith.constant dense<0.000000e+00> : vector<8x32xf32>
    %35 = tpu.matmul %34, %33, %cst_23 {dimension_numbers = #tpu.dot_dimension_numbers<[1], [0], [0], [1], [0, 0, 1, 1], [], []>} : vector<8x16xf32>, vector<16x32xf32>, vector<8x32xf32> -> vector<8x32xf32>
    %c0_24 = arith.constant 0 : index
    %c0_25 = arith.constant 0 : index
    %36 = vector.load %arg9[%c0_24, %c0_25] : memref<8x1xf32, #tpu.memory_space<vmem>>, vector<8x1xf32>
    %37 = vector.broadcast %36 : vector<8x1xf32> to vector<8x32xf32>
    %38 = arith.addf %35, %37 : vector<8x32xf32>
    %39 = arith.negf %38 : vector<8x32xf32>
    %40 = math.exp %39 : vector<8x32xf32>
    %cst_26 = arith.constant 1.000000e+00 : f32
    %41 = vector.broadcast %cst_26 : f32 to vector<8x32xf32>
    %42 = arith.addf %41, %40 : vector<8x32xf32>
    %43 = arith.divf %41, %42 : vector<8x32xf32>
    %c0_27 = arith.constant 0 : index
    %c0_28 = arith.constant 0 : index
    %44 = vector.load %arg10[%c0_27, %c0_28] : memref<8x16xf32, #tpu.memory_space<vmem>>, vector<8x16xf32>
    %cst_29 = arith.constant dense<0.000000e+00> : vector<8x32xf32>
    %45 = tpu.matmul %44, %33, %cst_29 {dimension_numbers = #tpu.dot_dimension_numbers<[1], [0], [0], [1], [0, 0, 1, 1], [], []>} : vector<8x16xf32>, vector<16x32xf32>, vector<8x32xf32> -> vector<8x32xf32>
    %c0_30 = arith.constant 0 : index
    %c0_31 = arith.constant 0 : index
    %46 = vector.load %arg11[%c0_30, %c0_31] : memref<8x1xf32, #tpu.memory_space<vmem>>, vector<8x1xf32>
    %47 = vector.broadcast %46 : vector<8x1xf32> to vector<8x32xf32>
    %48 = arith.addf %45, %47 : vector<8x32xf32>
    %49 = arith.negf %48 : vector<8x32xf32>
    %50 = math.exp %49 : vector<8x32xf32>
    %cst_32 = arith.constant 1.000000e+00 : f32
    %51 = vector.broadcast %cst_32 : f32 to vector<8x32xf32>
    %52 = arith.addf %51, %50 : vector<8x32xf32>
    %53 = arith.divf %51, %52 : vector<8x32xf32>
    %c0_33 = arith.constant 0 : index
    %c0_34 = arith.constant 0 : index
    %54 = vector.load %arg12[%c0_33, %c0_34] : memref<32x256xf32, #tpu.memory_space<vmem>>, vector<32x256xf32>
    %cst_35 = arith.constant dense<0.000000e+00> : vector<8x256xf32>
    %55 = tpu.matmul %43, %54, %cst_35 {dimension_numbers = #tpu.dot_dimension_numbers<[1], [0], [0], [1], [0, 0, 1, 1], [], []>} : vector<8x32xf32>, vector<32x256xf32>, vector<8x256xf32> -> vector<8x256xf32>
    %c0_36 = arith.constant 0 : index
    %c0_37 = arith.constant 0 : index
    %56 = vector.load %arg13[%c0_36, %c0_37] : memref<32x256xf32, #tpu.memory_space<vmem>>, vector<32x256xf32>
    %cst_38 = arith.constant dense<0.000000e+00> : vector<8x256xf32>
    %57 = tpu.matmul %53, %56, %cst_38 {dimension_numbers = #tpu.dot_dimension_numbers<[1], [0], [0], [1], [0, 0, 1, 1], [], []>} : vector<8x32xf32>, vector<32x256xf32>, vector<8x256xf32> -> vector<8x256xf32>
    %58 = arith.mulf %55, %57 : vector<8x256xf32>
    %c0_39 = arith.constant 0 : index
    %c0_40 = arith.constant 0 : index
    %59 = vector.load %arg14[%c0_39, %c0_40] : memref<8x256xf32, #tpu.memory_space<vmem>>, vector<8x256xf32>
    tpu.vector_store %arg14[%c0_39, %c0_40], %58 {strides = array<i32>} : memref<8x256xf32, #tpu.memory_space<vmem>>, vector<8x256xf32>,
    return
  }
  func.func @transform_0(%arg0: i32) -> (i32, i32) {
    %c0_i32 = arith.constant 0 : i32
    %c0_i32_0 = arith.constant 0 : i32
    return %arg0, %c0_i32 : i32, i32
  }
  func.func @transform_1(%arg0: i32) -> (i32, i32) {
    %c0_i32 = arith.constant 0 : i32
    %c0_i32_0 = arith.constant 0 : i32
    %c0_i32_1 = arith.constant 0 : i32
    return %c0_i32, %c0_i32_0 : i32, i32
  }
  func.func @transform_2(%arg0: i32) -> (i32, i32) {
    %c0_i32 = arith.constant 0 : i32
    %c0_i32_0 = arith.constant 0 : i32
    %c0_i32_1 = arith.constant 0 : i32
    return %c0_i32, %c0_i32_0 : i32, i32
  }
  func.func @transform_3(%arg0: i32) -> (i32, i32) {
    %c0_i32 = arith.constant 0 : i32
    %c0_i32_0 = arith.constant 0 : i32
    %c0_i32_1 = arith.constant 0 : i32
    return %c0_i32, %c0_i32_0 : i32, i32
  }
  func.func @transform_4(%arg0: i32) -> (i32, i32) {
    %c0_i32 = arith.constant 0 : i32
    %c0_i32_0 = arith.constant 0 : i32
    %c0_i32_1 = arith.constant 0 : i32
    return %c0_i32, %c0_i32_0 : i32, i32
  }
  func.func @transform_5(%arg0: i32) -> (i32, i32) {
    %c0_i32 = arith.constant 0 : i32
    %c0_i32_0 = arith.constant 0 : i32
    %c0_i32_1 = arith.constant 0 : i32
    return %c0_i32, %c0_i32_0 : i32, i32
  }
  func.func @transform_6(%arg0: i32) -> (i32, i32) {
    %c0_i32 = arith.constant 0 : i32
    %c0_i32_0 = arith.constant 0 : i32
    %c0_i32_1 = arith.constant 0 : i32
    return %c0_i32, %c0_i32_0 : i32, i32
  }
  func.func @transform_7(%arg0: i32) -> (i32, i32) {
    %c0_i32 = arith.constant 0 : i32
    %c0_i32_0 = arith.constant 0 : i32
    %c0_i32_1 = arith.constant 0 : i32
    return %c0_i32, %c0_i32_0 : i32, i32
  }
  func.func @transform_8(%arg0: i32) -> (i32, i32) {
    %c0_i32 = arith.constant 0 : i32
    %c0_i32_0 = arith.constant 0 : i32
    %c0_i32_1 = arith.constant 0 : i32
    return %c0_i32, %c0_i32_0 : i32, i32
  }
  func.func @transform_9(%arg0: i32) -> (i32, i32) {
    %c0_i32 = arith.constant 0 : i32
    %c0_i32_0 = arith.constant 0 : i32
    %c0_i32_1 = arith.constant 0 : i32
    return %c0_i32, %c0_i32_0 : i32, i32
  }
  func.func @transform_10(%arg0: i32) -> (i32, i32) {
    %c0_i32 = arith.constant 0 : i32
    %c0_i32_0 = arith.constant 0 : i32
    %c0_i32_1 = arith.constant 0 : i32
    return %c0_i32, %c0_i32_0 : i32, i32
  }
  func.func @transform_11(%arg0: i32) -> (i32, i32) {
    %c0_i32 = arith.constant 0 : i32
    %c0_i32_0 = arith.constant 0 : i32
    %c0_i32_1 = arith.constant 0 : i32
    return %c0_i32, %c0_i32_0 : i32, i32
  }
  func.func @transform_12(%arg0: i32) -> (i32, i32) {
    %c0_i32 = arith.constant 0 : i32
    %c0_i32_0 = arith.constant 0 : i32
    %c0_i32_1 = arith.constant 0 : i32
    return %c0_i32, %c0_i32_0 : i32, i32
  }
  func.func @transform_13(%arg0: i32) -> (i32, i32) {
    %c0_i32 = arith.constant 0 : i32
    %c0_i32_0 = arith.constant 0 : i32
    return %arg0, %c0_i32 : i32, i32
  }
}

</mosaic_0001>

<bundles_post_ra>
// kernel: arpg_forward.1
= control target key start
LH: loop header
LB: loop body
LE: loop exit
PB: predicated region body
PF: predicated region fallthrough
CT: control target
= control target key end

     0   :  { %vm162_vm0 = vcmask 64512   ;;  %v999_v51 = vmov 0   ;;  %vm246_vm1 = vcmask 261120   ;;  %vm253_vm2 = vcmask 130048   ;;  %s1291_s1 = inlined_call_operand.vmem [shape: f32[256,32], index: 1, kind: input, shape index: {}]   ;;  %s1292_s0 = inlined_call_operand.vmem [shape: f32[8,256], index: 0, kind: input, shape index: {}]   ;;  %s1293_s2 = inlined_call_operand.vmem [shape: f32[16,8], index: 2, kind: input, shape index: {}]   ;;  %s1294_s3 = inlined_call_operand.vmem [shape: f32[16,1], index: 3, kind: input, shape index: {}]   ;;  %s1295_s6 = inlined_call_operand.vmem [shape: f32[16,16], index: 6, kind: input, shape index: {}]   ;;  %s1296_s4 = inlined_call_operand.vmem [shape: f32[16,1], index: 4, kind: input, shape index: {}]   ;;  %s1297_s5 = inlined_call_operand.vmem [shape: f32[16,1], index: 5, kind: input, shape index: {}]   ;;  %s1298_s8 = inlined_call_operand.vmem [shape: f32[8,1], index: 8, kind: input, shape index: {}]   ;;  %s1299_s10 = inlined_call_operand.vmem [shape: f32[8,1], index: 10, kind: input, shape index: {}]   ;;  %s1300_s7 = inlined_call_operand.vmem [shape: f32[8,16], index: 7, kind: input, shape index: {}]   ;;  %s1301_s9 = inlined_call_operand.vmem [shape: f32[8,16], index: 9, kind: input, shape index: {}]   ;;  %s1302_s11 = inlined_call_operand.vmem [shape: f32[32,256], index: 11, kind: input, shape index: {}]   ;;  %s1303_s12 = inlined_call_operand.vmem [shape: f32[32,256], index: 12, kind: input, shape index: {}]   ;;  %s1304_s13 = inlined_call_operand.vmem [shape: f32[8,256], index: 13, kind: output, shape index: {}]  }
   0x1   :  { %v62_v0 = vld [vmem:[%s1291_s1 + $0x80] sm:$0xff]  ;;  %v63_v1 = vld [vmem:[%s1291_s1 + $0x88] sm:$0xff]  ;;  %v64_v5 = vld [vmem:[%s1291_s1 + $0x90] sm:$0xff]  ;;  %985 = vset.pattern.permute.xlu0 %v999_v51  ;;  %986 = vset.pattern.permute.xlu1 %v999_v51  ;;  %vm1001_vm3 = vmmov 0  }
   0x2   :  { %v46_v2 = vld [vmem:[%s1291_s1] sm:$0xff]  ;;  %v919_v3 = vpack.c.bf16 %v63_v1, %v62_v0  ;;  %v47_v4 = vld [vmem:[%s1291_s1 + $0x8] sm:$0xff]  ;;  %v65_v6 = vld [vmem:[%s1291_s1 + $0x98] sm:$0xff] }
   0x3   :  { %v921_v7 = vpack.c.bf16 %v47_v4, %v46_v2  ;;  %v923_v8 = vpack.c.bf16 %v65_v6, %v64_v5  ;;  %v48_v9 = vld [vmem:[%s1291_s1 + $0x10] sm:$0xff]  ;;  %v49_v10 = vld [vmem:[%s1291_s1 + $0x18] sm:$0xff]  ;;  %v66_v11 = vld [vmem:[%s1291_s1 + $0xa0] sm:$0xff] }
   0x4   :  { %920 = vmatprep.subr.bf16.mxu0 %v919_v3  ;;  %v67_v12 = vld [vmem:[%s1291_s1 + $0xa8] sm:$0xff]  ;;  %v925_v13 = vpack.c.bf16 %v49_v10, %v48_v9  ;;  %v50_v15 = vld [vmem:[%s1291_s1 + $0x20] sm:$0xff]  ;;  %v68_v17 = vld [vmem:[%s1291_s1 + $0xb0] sm:$0xff] }
   0x5   :  { %922 = vmatpush3.bf16.msra.mxu0 %v921_v7  ;;  %v927_v14 = vpack.c.bf16 %v67_v12, %v66_v11  ;;  %v51_v16 = vld [vmem:[%s1291_s1 + $0x28] sm:$0xff]  ;;  %v69_v18 = vld [vmem:[%s1291_s1 + $0xb8] sm:$0xff]  ;;  %v52_v21 = vld [vmem:[%s1291_s1 + $0x30] sm:$0xff] }
   0x6   :  { %924 = vmatprep.subr.bf16.mxu0 %v923_v8  ;;  %v929_v19 = vpack.c.bf16 %v51_v16, %v50_v15  ;;  %v931_v20 = vpack.c.bf16 %v69_v18, %v68_v17  ;;  %v53_v22 = vld [vmem:[%s1291_s1 + $0x38] sm:$0xff]  ;;  %v70_v23 = vld [vmem:[%s1291_s1 + $0xc0] sm:$0xff]  ;;  %v71_v24 = vld [vmem:[%s1291_s1 + $0xc8] sm:$0xff] }
   0x7   :  { %v45_v25 = vld [vmem:[%s1292_s0 + $0x8] sm:$0xff]  ;;  %v933_v26 = vpack.c.bf16 %v53_v22, %v52_v21  ;;  %v935_v27 = vpack.c.bf16 %v71_v24, %v70_v23  ;;  %v54_v28 = vld [vmem:[%s1291_s1 + $0x40] sm:$0xff]  ;;  %v72_v30 = vld [vmem:[%s1291_s1 + $0xd0] sm:$0xff] }
   0x8   :  { %142 = vmatprep.mubr.f32.mxu0 %v45_v25  ;;  %v55_v29 = vld [vmem:[%s1291_s1 + $0x48] sm:$0xff]  ;;  %v73_v31 = vld [vmem:[%s1291_s1 + $0xd8] sm:$0xff]  ;;  %v56_v34 = vld [vmem:[%s1291_s1 + $0x50] sm:$0xff] }
   0x9   :  { %926 = vmatpush3.bf16.msra.mxu0 %v925_v13  ;;  %v937_v32 = vpack.c.bf16 %v55_v29, %v54_v28  ;;  %v939_v33 = vpack.c.bf16 %v73_v31, %v72_v30  ;;  %v57_v35 = vld [vmem:[%s1291_s1 + $0x58] sm:$0xff]  ;;  %v74_v36 = vld [vmem:[%s1291_s1 + $0xe0] sm:$0xff]  ;;  %v75_v37 = vld [vmem:[%s1291_s1 + $0xe8] sm:$0xff] }
   0xa   :  { %928 = vmatprep.subr.bf16.mxu0 %v927_v14  ;;  %v941_v38 = vpack.c.bf16 %v57_v35, %v56_v34  ;;  %v943_v39 = vpack.c.bf16 %v75_v37, %v74_v36  ;;  %v58_v40 = vld [vmem:[%s1291_s1 + $0x60] sm:$0xff]  ;;  %v59_v41 = vld [vmem:[%s1291_s1 + $0x68] sm:$0xff]  ;;  %v76_v42 = vld [vmem:[%s1291_s1 + $0xf0] sm:$0xff] }
   0xb   :  { %v77_v43 = vld [vmem:[%s1291_s1 + $0xf8] sm:$0xff]  ;;  %v945_v44 = vpack.c.bf16 %v59_v41, %v58_v40  ;;  %v60_v46 = vld [vmem:[%s1291_s1 + $0x70] sm:$0xff]  ;;  %v44_v49 = vld [vmem:[%s1292_s0] sm:$0xff] }
   0xc   :  { %v947_v45 = vpack.c.bf16 %v77_v43, %v76_v42  ;;  %v61_v47 = vld [vmem:[%s1291_s1 + $0x78] sm:$0xff]  ;;  %v148_v50 = vld [vmem:[%s1293_s2] sm:$0xff]  ;;  %v151_v53 = vld [vmem:[%s1294_s3 + $0x8] sm:$0xff] }
   0xd   :  { %930 = vmatpush3.bf16.msra.mxu0 %v929_v19  ;;  %v949_v48 = vpack.c.bf16 %v61_v47, %v60_v46  ;;  %888 = vmatprep.mubr.msk.f32.mxu1 %vm162_vm0, %v148_v50  ;;  %v150_v52 = vld [vmem:[%s1294_s3] sm:$0xff]  ;;  %v149_v57 = vld [vmem:[%s1293_s2 + $0x8] sm:$0xff] }
   0xe   :  { %932 = vmatprep.subr.bf16.mxu0 %v931_v20  ;;  %154 = vperm.xlu0 %985, %v150_v52   ;;  %v244_v2 = vld [vmem:[%s1295_s6] sm:$0xff]  ;;  %v245_v6 = vld [vmem:[%s1295_s6 + $0x8] sm:$0xff] }
   0xf   :  { %v444_v17 = vld [vmem:[%s1296_s4] sm:$0xff]  ;;  %v445_v18 = vld [vmem:[%s1296_s4 + $0x8] sm:$0xff] }
  0x10   :  { %v458_v19 = vld [vmem:[%s1297_s5] sm:$0xff]  ;;  %v459_v30 = vld [vmem:[%s1297_s5 + $0x8] sm:$0xff] }
  0x11   :  { %934 = vmatpush3.bf16.msra.mxu0 %v933_v26  ;;  %v479_v29 = vld [vmem:[%s1298_s8] sm:$0xff] }
  0x12   :  { %936 = vmatprep.subr.bf16.mxu0 %v935_v27  ;;  %159 = vperm.xlu0 %985, %v151_v53   ;;  %v565_v31 = vld [vmem:[%s1299_s10] sm:$0xff]  ;;  %v651_v53 = vld [vmem:[%s1302_s11 + $0x8] sm:$0xff] }
  0x13   :  { %v478_v51 = vld [vmem:[%s1300_s7] sm:$0xff] }
  0x14   :  { %v564_v52 = vld [vmem:[%s1301_s9] sm:$0xff] }
  0x15   :  { %938 = vmatpush3.bf16.msra.mxu0 %v937_v32  ;;  %v1000_v32 = vmov 0.0|0.0  }
  0x16   :  { %940 = vmatprep.subr.bf16.mxu0 %v939_v33  ;;  %v1002_v33 = vmov 0.0  }
  0x19   :  { %942 = vmatpush3.bf16.msra.mxu0 %v941_v38 }
  0x1a   :  { %944 = vmatprep.subr.bf16.mxu0 %v943_v39 }
  0x1d   :  { %946 = vmatpush3.bf16.msra.mxu0 %v945_v44 }
  0x1e   :  { %948 = vmatprep.subr.bf16.mxu0 %v947_v45 }
  0x21   :  { %950 = vmatpush3.bf16.msra.mxu0 %v949_v48 }
  0x24   :  { %143 = vmatmul.mubr.f32.vlgmr.msra.gmra.mrb[0].mxu0 %v44_v49 }
  0x8d   :  { %v155_v58 = vpop.permute.xlu0 %154 }
  0x91   :  { %v160_v60 = vpop.permute.xlu0 %159 }
  0xf7   :  { %v866_v54 = vpop.f32.mrb[0].mxu0 }
  0xf8   :  { %v867_v55 = vpop.f32.mrb[1].mxu0 }
  0xf9   :  { %v868_v56 = vadd.f32 %v867_v55, %v866_v54  ;;  %v653_v54 = vld [vmem:[%s1302_s11 + $0x18] sm:$0xff] }
  0xfa   :  { %v965_v55 = vpack.c.bf16 %v653_v54, %v651_v53 }
  0xfb   :  { %886 = vmatprep.subr.mxu1 %v868_v56 }
  0xfc   :  { %887 = vmatpush3.msra.mxu1 %v868_v56  ;;  %v650_v56 = vld [vmem:[%s1302_s11] sm:$0xff] }
  0xfd   :  { %889 = vmatmul.mubr.msk.f32.vlgmr.msra.gmra.mrb[0].mxu1 %vm162_vm0, %v149_v57  ;;  %v652_v57 = vld [vmem:[%s1302_s11 + $0x10] sm:$0xff] }
  0xfe   :  { %895 = vmatprep.mubr.msk.f32.mxu1 %vm253_vm2, %v244_v2 }
 0x1d0   :  { %v890_v59 = vpop.f32.mrb[0].mxu1 }
 0x1d1   :  { %v235_v61 = vpop.f32.mrb[1].mxu1  ;;  %v241_v63 = vadd.f32 %v890_v59, %v160_v60  ;;  %v655_v59 = vld [vmem:[%s1302_s11 + $0x28] sm:$0xff]  ;;  %v657_v60 = vld [vmem:[%s1302_s11 + $0x38] sm:$0xff] }
 0x1d2   :  { %v236_v62 = vadd.f32 %v235_v61, %v155_v58  ;;  %v967_v58 = vpack.c.bf16 %v652_v57, %v650_v56  ;;  %v969_v61 = vpack.c.bf16 %v657_v60, %v655_v59 }
 0x1d3   :  { %v250_v1 = vsel %vm246_vm1, %v241_v63, 0.0 }
 0x1d4   :  { %v247_v0 = vsel %vm246_vm1, %v236_v62, 0.0 }
 0x1d5   :  { %248 = vadd.xlane.f32.xlu1 %v247_v0 }
 0x1d9   :  { %251 = vadd.xlane.f32.xlu1 %v250_v1  ;;  %v733_v1 = vld [vmem:[%s1303_s12 + $0x8] sm:$0xff] }
 0x262   :  { %v249_v3 = vpop.xlane.xlu1 %248 }
 0x266   :  { %v252_v4 = vpop.xlane.xlu1 %251 }
 0x267   :  { %v951_v5 = vpack.c.bf16 %v252_v4, %v249_v3 }
 0x269   :  { %952 = vmatprep.subr.bf16.mxu1 %v951_v5 }
 0x26a   :  { %954 = vmatpush3.bf16.msra.mxu1 %v951_v5 }
 0x26d   :  { %896 = vmatmul.mubr.msk.f32.vlgmr.msra.gmra.mrb[2].mxu1 %vm253_vm2, %v245_v6 }
 0x26e   :  { %902 = vmatprep.mubr.msk.f32.mxu1 %vm253_vm2, %v244_v2  ;;  %v735_v2 = vld [vmem:[%s1303_s12 + $0x18] sm:$0xff] }
 0x26f   :  { %v973_v3 = vpack.c.bf16 %v735_v2, %v733_v1 }
 0x340   :  { %v897_v7 = vpop.f32.mrb[2].mxu1 }
 0x341   :  { %342 = vperm.xlu1 %986, %v897_v7   ;;  %v326_v8 = vpop.f32.mrb[3].mxu1 }
 0x342   :  { %337 = vperm.xlu0 %985, %v326_v8  }
 0x3c0   :  { %v343_v9 = vpop.permute.xlu1 %342 }
 0x3c1   :  { %v346_v10 = vsub.f32 %v241_v63, %v343_v9  ;;  %v338_v11 = vpop.permute.xlu0 %337  ;;  %v656_v63 = vld [vmem:[%s1302_s11 + $0x30] sm:$0xff] }
 0x3c2   :  { %v345_v12 = vsub.f32 %v236_v62, %v338_v11  ;;  %v654_v62 = vld [vmem:[%s1302_s11 + $0x20] sm:$0xff] }
 0x3c3   :  { %v348_v13 = vmul.f32 %v346_v10, %v346_v10  ;;  %v971_v0 = vpack.c.bf16 %v656_v63, %v654_v62 }
 0x3c4   :  { %v347_v14 = vmul.f32 %v345_v12, %v345_v12 }
 0x3c5   :  { %v352_v15 = vsel %vm246_vm1, %v348_v13, 0.0 }
 0x3c6   :  { %353 = vadd.xlane.f32.xlu1 %v352_v15  ;;  %v349_v16 = vsel %vm246_vm1, %v347_v14, 0.0 }
 0x3c7   :  { %350 = vadd.xlane.f32.xlu0 %v349_v16 }
 0x3dd   :  { %448 = vperm.xlu0 %985, %v444_v17  }
 0x3e1   :  { %453 = vperm.xlu0 %985, %v445_v18   ;;  %v732_v18 = vld [vmem:[%s1303_s12] sm:$0xff] }
 0x3e5   :  { %462 = vperm.xlu0 %985, %v458_v19   ;;  %v734_v19 = vld [vmem:[%s1303_s12 + $0x10] sm:$0xff] }
 0x453   :  { %v354_v20 = vpop.xlane.xlu1 %353 }
 0x454   :  { %v351_v21 = vpop.xlane.xlu0 %350 }
 0x455   :  { %v955_v22 = vpack.c.bf16 %v354_v20, %v351_v21  ;;  %v737_v20 = vld [vmem:[%s1303_s12 + $0x28] sm:$0xff]  ;;  %v739_v21 = vld [vmem:[%s1303_s12 + $0x38] sm:$0xff] }
 0x457   :  { %956 = vmatprep.subr.bf16.mxu1 %v955_v22 }
 0x458   :  { %958 = vmatpush3.bf16.msra.mxu1 %v955_v22  ;;  %v975_v22 = vpack.c.bf16 %v734_v19, %v732_v18 }
 0x459   :  { %959 = vmatprep.subr.bf16.mxu1 %v1000_v32 }
 0x45b   :  { %903 = vmatmul.mubr.msk.f32.vlgmr.msra.gmra.mrb[4].mxu1 %vm253_vm2, %v245_v6 }
 0x45c   :  { %909 = vmatprep.mubr.msk.f32.mxu1 %vm1001_vm3, %v1002_v33  ;;  %v449_v34 = vpop.permute.xlu0 %448 }
 0x460   :  { %v454_v35 = vpop.permute.xlu0 %453 }
 0x464   :  { %v463_v36 = vpop.permute.xlu0 %462 }
 0x52e   :  { %v904_v23 = vpop.f32.mrb[4].mxu1 }
 0x52f   :  { %v427_v24 = vadd.f32 1e-05, %v904_v23  ;;  %v421_v25 = vpop.f32.mrb[5].mxu1  ;;  %v977_v23 = vpack.c.bf16 %v739_v21, %v737_v20 }
 0x530   :  { %v422_v26 = vadd.f32 1e-05, %v421_v25  ;;  %v738_v25 = vld [vmem:[%s1303_s12 + $0x30] sm:$0xff] }
 0x531   :  { %987 = vrsqrt.f32 %v427_v24  ;;  %v736_v24 = vld [vmem:[%s1303_s12 + $0x20] sm:$0xff] }
 0x532   :  { %989 = vrsqrt.f32 %v422_v26 }
 0x53b   :  { %v988_v27 = vpop.eup %987 }
 0x53c   :  { %v990_v28 = vpop.eup %989  ;;  %439 = vperm.xlu1 %986, %v988_v27   ;;  %v979_v27 = vpack.c.bf16 %v738_v25, %v736_v24 }
 0x53d   :  { %434 = vperm.xlu0 %985, %v990_v28  }
 0x540   :  { %482 = vperm.xlu1 %986, %v479_v29  }
 0x541   :  { %467 = vperm.xlu0 %985, %v459_v30  }
 0x545   :  { %568 = vperm.xlu0 %985, %v565_v31  }
 0x5bb   :  { %v440_v37 = vpop.permute.xlu1 %439 }
 0x5bc   :  { %v443_v38 = vmul.f32 %v440_v37, %v346_v10  ;;  %v435_v39 = vpop.permute.xlu0 %434 }
 0x5bd   :  { %v442_v40 = vmul.f32 %v435_v39, %v345_v12 }
 0x5be   :  { %v457_v41 = vmul.f32 %v454_v35, %v443_v38 }
 0x5bf   :  { %v456_v42 = vmul.f32 %v449_v34, %v442_v40  ;;  %v483_v4 = vpop.permute.xlu1 %482 }
 0x5c0   :  { %v468_v43 = vpop.permute.xlu0 %467 }
 0x5c1   :  { %v470_v44 = vadd.f32 %v463_v36, %v456_v42  ;;  %v471_v45 = vadd.f32 %v468_v43, %v457_v41 }
 0x5c3   :  { %vm472_vm4 = vcmp.gt.f32.partialorder %v470_v44, 0.0  ;;  %v474_v46 = vmul.f32 0.2, %v470_v44  ;;  %vm473_vm5 = vcmp.gt.f32.partialorder %v471_v45, 0.0  ;;  %v475_v47 = vmul.f32 0.2, %v471_v45 }
 0x5c4   :  { %v569_v9 = vpop.permute.xlu0 %568 }
 0x5c5   :  { %v476_v48 = vsel %vm472_vm4, %v470_v44, %v474_v46  ;;  %v477_v49 = vsel %vm473_vm5, %v471_v45, %v475_v47 }
 0x5c6   :  { %v960_v50 = vpack.c.bf16 %v477_v49, %v476_v48 }
 0x5c8   :  { %961 = vmatpush3.bf16.msra.mxu1 %v960_v50 }
 0x5c9   :  { %962 = vmatprep.subr.bf16.mxu1 %v1000_v32 }
 0x5cb   :  { %910 = vmatmul.mubr.msk.f32.vlgmr.msra.gmra.mrb[6].mxu1 %vm253_vm2, %v478_v51 }
 0x5cc   :  { %964 = vmatpush3.bf16.msra.mxu1 %v960_v50  ;;  %916 = vmatprep.mubr.msk.f32.mxu1 %vm1001_vm3, %v1002_v33 }
 0x5cd   :  { %966 = vmatprep.subr.bf16.mxu1 %v965_v55 }
 0x5cf   :  { %917 = vmatmul.mubr.msk.f32.vlgmr.msra.gmra.mrb[8].mxu1 %vm253_vm2, %v564_v52 }
 0x5d0   :  { %725 = vmatprep.mubr.f32.mxu1 %v1002_v33  ;;  %968 = vmatpush1.bf16.msra.mxu1 %v967_v58 }
 0x5d1   :  { %970 = vmatprep.subr.bf16.mxu1 %v969_v61 }
 0x5d4   :  { %972 = vmatpush1.bf16.msra.mxu1 %v971_v0 }
 0x5d5   :  { %974 = vmatprep.subr.bf16.mxu1 %v973_v3 }
 0x69e   :  { %v554_v5 = vpop.f32.mrb[6].mxu1 }
 0x69f   :  { %v555_v6 = vadd.f32 %v554_v5, %v483_v4  ;;  %v911_v7 = vpop.f32.mrb[7].mxu1 }
 0x6a1   :  { %v829_v8 = vmul.f32 -1.442695, %v555_v6 }
 0x6a2   :  { %v640_v10 = vpop.f32.mrb[8].mxu1 }
 0x6a3   :  { %991 = vpow2.f32 %v829_v8  ;;  %v641_v11 = vadd.f32 %v640_v10, %v569_v9  ;;  %v918_v12 = vpop.f32.mrb[9].mxu1 }
 0x6a5   :  { %v831_v13 = vmul.f32 -1.442695, %v641_v11 }
 0x6a7   :  { %993 = vpow2.f32 %v831_v13 }
 0x6ad   :  { %v992_v14 = vpop.eup %991 }
 0x6ae   :  { %v561_v15 = vadd.f32 1.0, %v992_v14 }
 0x6b0   :  { %995 = vrcp.f32 %v561_v15 }
 0x6b1   :  { %v994_v16 = vpop.eup %993 }
 0x6b2   :  { %v647_v17 = vadd.f32 1.0, %v994_v16 }
 0x6b4   :  { %997 = vrcp.f32 %v647_v17 }
 0x6ba   :  { %v996_v26 = vpop.eup %995 }
 0x6bb   :  { %832 = vmatmul.mubr.msk.f32.vlgmr.msra.gmra.mrb[10].mxu1 %vm246_vm1, %v996_v26 }
 0x6bc   :  { %976 = vmatpush1.bf16.msra.mxu1 %v975_v22  ;;  %807 = vmatprep.mubr.f32.mxu1 %v1002_v33 }
 0x6bd   :  { %978 = vmatprep.subr.bf16.mxu1 %v977_v23 }
 0x6be   :  { %v998_v28 = vpop.eup %997 }
 0x6c0   :  { %980 = vmatpush1.bf16.msra.mxu1 %v979_v27 }
 0x6c3   :  { %833 = vmatmul.mubr.msk.f32.vlgmr.msra.gmra.mrb[12].mxu1 %vm246_vm1, %v998_v28 }
 0x78e   :  { %v727_v29 = vpop.f32.mrb[10].mxu1 }
 0x78f   :  { %v729_v30 = vpop.f32.mrb[11].mxu1 }
 0x796   :  { %v809_v31 = vpop.f32.mrb[12].mxu1 }
 0x797   :  { %v814_v32 = vmul.f32 %v809_v31, %v727_v29  ;;  %v811_v34 = vpop.f32.mrb[13].mxu1 }
 0x798   :  { %v815_v35 = vmul.f32 %v811_v34, %v729_v30 }
 0x799   :  { %816 = vst [vmem:[%s1304_s13] sm:$0xff] %v814_v32 }
 0x79a   :  { %817 = vst [vmem:[%s1304_s13 + $0x8] sm:$0xff] %v815_v35 }

</bundles_post_ra>
